<compile_context>
chip_gen: v7x
topology: tpu7x:2x2x1
jax: 0.10.0
libtpu: 0.0.40
codegen_flags: <defaults>
</compile_context>

<pallas_src>
import math

import jax
import jax.numpy as jnp
import numpy as np
from jax.experimental import pallas as pl
from jax.experimental.pallas import tpu as pltpu


# ----------------------------- config ---------------------------------------
N_EMBD = 32
N_HEAD = 4
HEAD_DIM = N_EMBD // N_HEAD
MLP_DIM = 4 * N_EMBD
SEQ = 8
BATCH = 2
LN_EPS = 1e-5
NEG_INF = -1e30


def _layernorm(x, w, b):
    # x: (R, E), w/b: (1, E)
    mean = jnp.mean(x, axis=-1, keepdims=True)
    var = jnp.mean((x - mean) ** 2, axis=-1, keepdims=True)
    inv = jax.lax.rsqrt(var + LN_EPS)
    return (x - mean) * inv * w + b


def _gelu_exact(x):
    # matches torch.nn.functional.gelu default (erf-based)
    return 0.5 * x * (1.0 + jax.lax.erf(x / jnp.sqrt(2.0).astype(x.dtype)))


# ----------------------------- kernel ----------------------------------------
def gpt2_block_kernel(x_ref, vec_ref, w1_ref, wp2_ref, o_ref):
    BS, E = x_ref.shape          # (B*S, E) = (16, 32)
    F = MLP_DIM                  # 128
    H, D = N_HEAD, HEAD_DIM
    HR = H * BS                  # 64 head-rows

    x = x_ref[...]                                           # (BS, E)

    # --- unpack the consolidated vector slab (static slices) ---
    mask_add = vec_ref[0:HR, 0:HR]                           # (64, 64) additive mask
    bqkv = vec_ref[HR + 0:HR + 1, 0:3 * E]                   # (1, 96)  (Q part pre-scaled)
    ln1w = vec_ref[HR + 1:HR + 2, 0:E]
    ln1b = vec_ref[HR + 2:HR + 3, 0:E]
    ln2w = vec_ref[HR + 3:HR + 4, 0:E]
    ln2b = vec_ref[HR + 4:HR + 5, 0:E]
    bo = vec_ref[HR + 5:HR + 6, 0:E]
    bp2 = vec_ref[HR + 6:HR + 7, 0:E]
    bfc = vec_ref[HR + 7:HR + 8, 0:F]

    # --- unpack the lane-concatenated weight slab ---
    wqkv = w1_ref[:, 0:3 * E]                                # (32, 96)  scale folded into Q
    wo = w1_ref[:, 3 * E:4 * E]                              # (32, 32)
    wfc = w1_ref[:, 4 * E:4 * E + F]                         # (32, 128)

    # ---------------- ln_1 + causal self-attention ----------------
    h = _layernorm(x, ln1w, ln1b)                            # (BS, E)

    # one lane-dense QKV matmul
    qkv = jnp.dot(h, wqkv, preferred_element_type=jnp.float32) + bqkv   # (16, 96)

    # re-layout heads onto the row axis: (BS, H*D) -> (H*BS, D)
    def to_head_rows(t):
        return jnp.concatenate([t[:, hh * D:(hh + 1) * D] for hh in range(H)], axis=0)

    q_r = to_head_rows(qkv[:, 0:E])                          # (64, 8)
    k_r = to_head_rows(qkv[:, E:2 * E])                      # (64, 8)
    v_r = to_head_rows(qkv[:, 2 * E:3 * E])                  # (64, 8)

    # scores[r, c] = sum_d q_r[r, d] * k_r[c, d]  -> ONE (64,8)x(8,64) MXU matmul
    scores = jax.lax.dot_general(
        q_r, k_r, dimension_numbers=(((1,), (1,)), ((), ())),
        preferred_element_type=jnp.float32) + mask_add       # (64, 64)

    # softmax (exact divide; masked entries underflow to exactly 0)
    scores = scores - jnp.max(scores, axis=-1, keepdims=True)
    p = jnp.exp(scores)
    p = p / jnp.sum(p, axis=-1, keepdims=True)

    # ctx_r[r, d] = sum_c p[r, c] v_r[c, d]  -> ONE (64,64)x(64,8) matmul
    ctx_r = jnp.dot(p, v_r, preferred_element_type=jnp.float32)         # (64, 8)

    # back to (BS, H*D): 3 static lane-offset placements
    ctx = jnp.concatenate(
        [ctx_r[hh * BS:(hh + 1) * BS, :] for hh in range(H)], axis=1)   # (16, 32)

    attn = jnp.dot(ctx, wo, preferred_element_type=jnp.float32) + bo    # (16, 32)
    x = x + attn                                             # residual 1

    # ---------------- ln_2 + MLP ----------------
    h2 = _layernorm(x, ln2w, ln2b)                           # (BS, E)
    ff = jnp.dot(h2, wfc, preferred_element_type=jnp.float32) + bfc     # (16, 128)
    ff = _gelu_exact(ff)
    ff = jnp.dot(ff, wp2_ref[...], preferred_element_type=jnp.float32) + bp2

    o_ref[...] = x + ff                                      # residual 2


# ----------------------------- host-side packing ----------------------------
def pack_params(params, batch, seq):
    """One-time re-layout: mask + vector slab, one lane-concatenated weight slab."""
    (ln1w, ln1b, wqkv, bqkv, wo, bo, ln2w, ln2b, wfc, bfc, wp2, bp2) = params
    E, H, D, F = N_EMBD, N_HEAD, HEAD_DIM, MLP_DIM
    BS = batch * seq
    HR = H * BS                                              # 64

    # fold 1/sqrt(head_dim) into the Q columns of c_attn weight & bias
    scale = 1.0 / math.sqrt(D)
    wqkv_s = np.array(wqkv, np.float32, copy=True)
    bqkv_s = np.array(bqkv, np.float32, copy=True).reshape(-1)
    wqkv_s[:, 0:E] *= scale
    bqkv_s[0:E] *= scale

    # (64, 64) additive mask: block-diag over head x batch, causal within a sequence
    r = np.arange(HR)
    h_i, bs_i = r // BS, r % BS
    b_i, s_i = bs_i // seq, bs_i % seq
    keep = ((h_i[:, None] == h_i[None, :]) &
            (b_i[:, None] == b_i[None, :]) &
            (s_i[None, :] <= s_i[:, None]))
    mask_add = np.where(keep, 0.0, NEG_INF).astype(np.float32)

    # vector slab: (72, 128) = mask rows + 8 parameter rows (row count multiple of 8)
    vec = np.zeros((HR + 8, F), np.float32)
    vec[0:HR, 0:HR] = mask_add
    vec[HR + 0, 0:3 * E] = bqkv_s
    vec[HR + 1, 0:E] = np.asarray(ln1w).reshape(-1)
    vec[HR + 2, 0:E] = np.asarray(ln1b).reshape(-1)
    vec[HR + 3, 0:E] = np.asarray(ln2w).reshape(-1)
    vec[HR + 4, 0:E] = np.asarray(ln2b).reshape(-1)
    vec[HR + 5, 0:E] = np.asarray(bo).reshape(-1)
    vec[HR + 6, 0:E] = np.asarray(bp2).reshape(-1)
    vec[HR + 7, 0:F] = np.asarray(bfc).reshape(-1)

    # lane-concatenated weight slab: [Wqkv(32,96) | Wo(32,32) | Wfc(32,128)] -> (32, 256)
    w1 = np.concatenate([wqkv_s,
                         np.asarray(wo, np.float32),
                         np.asarray(wfc, np.float32)], axis=1)

    return (jnp.asarray(vec), jnp.asarray(w1), jnp.asarray(wp2, dtype=jnp.float32))


# ----------------------------- wrapper ---------------------------------------
def gpt2_block(x, packed):
    B, S, E = x.shape
    xf = x.reshape(B * S, E)                        # free: contiguous reshape
    vec_slab, w1, wp2 = packed
    inputs = (xf, vec_slab, w1, wp2)

    def full_spec(a):
        nd = a.ndim
        return pl.BlockSpec(a.shape, lambda i, _nd=nd: (0,) * _nd)

    grid_spec = pltpu.PrefetchScalarGridSpec(
        num_scalar_prefetch=0,
        grid=(1,),                                  # single invocation (grid collapsed)
        in_specs=[full_spec(a) for a in inputs],
        out_specs=pl.BlockSpec((B * S, E), lambda i: (0, 0)),
    )

    out = pl.pallas_call(
        gpt2_block_kernel,
        out_shape=jax.ShapeDtypeStruct((B * S, E), jnp.float32),
        grid_spec=grid_spec,
        compiler_params=pltpu.CompilerParams(
            dimension_semantics=("arbitrary",)),
    )(*inputs)
    return out.reshape(B, S, E)


# ----------------------------- reference (plain JAX) -------------------------
def gpt2_block_ref(x, params):
    (ln1w, ln1b, wqkv, bqkv, wo, bo, ln2w, ln2b, wfc, bfc, wp2, bp2) = params
    B, S, E = x.shape

    def ln(t, w, b):
        m = jnp.mean(t, -1, keepdims=True)
        v = jnp.mean((t - m) ** 2, -1, keepdims=True)
        return (t - m) / jnp.sqrt(v + LN_EPS) * w + b

    h = ln(x, ln1w, ln1b)
    qkv = h @ wqkv + bqkv
    q, k, v = jnp.split(qkv, 3, axis=-1)
    q = q.reshape(B, S, N_HEAD, HEAD_DIM).transpose(0, 2, 1, 3)
    k = k.reshape(B, S, N_HEAD, HEAD_DIM).transpose(0, 2, 1, 3)
    v = v.reshape(B, S, N_HEAD, HEAD_DIM).transpose(0, 2, 1, 3)
    sc = (q @ k.transpose(0, 1, 3, 2)) / math.sqrt(HEAD_DIM)
    mask = jnp.tril(jnp.ones((S, S), bool))
    sc = jnp.where(mask, sc, -jnp.inf)
    p = jax.nn.softmax(sc, axis=-1)
    ao = (p @ v).transpose(0, 2, 1, 3).reshape(B, S, E)
    ao = ao @ wo + bo
    x = x + ao
    h2 = ln(x, ln2w, ln2b)
    ff = jax.nn.gelu(h2 @ wfc + bfc, approximate=False)
    ff = ff @ wp2 + bp2
    return x + ff


if __name__ == "__main__":
    key = jax.random.PRNGKey(0)
    ks = jax.random.split(key, 8)

    x = jax.random.normal(ks[0], (BATCH, SEQ, N_EMBD), jnp.float32)

    def winit(k, shape, fan_in):
        return jax.random.normal(k, shape, jnp.float32) * (1.0 / math.sqrt(fan_in))

    params = (
        jnp.ones((1, N_EMBD), jnp.float32),                 # ln1 weight
        jnp.zeros((1, N_EMBD), jnp.float32),                # ln1 bias
        winit(ks[1], (N_EMBD, 3 * N_EMBD), N_EMBD),         # c_attn W  (in, out)
        jnp.zeros((1, 3 * N_EMBD), jnp.float32),            # c_attn b
        winit(ks[2], (N_EMBD, N_EMBD), N_EMBD),             # attn c_proj W
        jnp.zeros((1, N_EMBD), jnp.float32),                # attn c_proj b
        jnp.ones((1, N_EMBD), jnp.float32),                 # ln2 weight
        jnp.zeros((1, N_EMBD), jnp.float32),                # ln2 bias
        winit(ks[3], (N_EMBD, 4 * N_EMBD), N_EMBD),         # mlp c_fc W
        jnp.zeros((1, 4 * N_EMBD), jnp.float32),            # mlp c_fc b
        winit(ks[4], (4 * N_EMBD, N_EMBD), 4 * N_EMBD),     # mlp c_proj W
        jnp.zeros((1, N_EMBD), jnp.float32),                # mlp c_proj b
    )

    packed = pack_params(params, BATCH, SEQ)

    out = gpt2_block(x, packed)
    out = jax.block_until_ready(out)

    ref = gpt2_block_ref(x, params)
    np.testing.assert_allclose(np.asarray(out), np.asarray(ref), rtol=2e-3, atol=2e-3)

    print("KERNEL_OK")
</pallas_src>

<mosaic_0001>
module attributes {stable_mosaic.version = 11 : i64} {
  func.func @gpt2_block_kernel(%arg0: i32, %arg1: memref<16x32xf32, #tpu.memory_space<vmem>>, %arg2: memref<72x128xf32, #tpu.memory_space<vmem>>, %arg3: memref<32x256xf32, #tpu.memory_space<vmem>>, %arg4: memref<128x32xf32, #tpu.memory_space<vmem>>, %arg5: memref<16x32xf32, #tpu.memory_space<vmem>>) attributes {dimension_semantics = [#tpu.dimension_semantics<arbitrary>], iteration_bounds = array<i64: 1>, scalar_prefetch = 0 : i64, scratch_operands = 0 : i64, tpu.core_type = #tpu.core_type<tc>, window_params = [{pipeline_mode = #tpu.pipeline_mode<synchronous>, transform_indices = @transform_0, window_bounds = array<i64: 16, 32>}, {pipeline_mode = #tpu.pipeline_mode<synchronous>, transform_indices = @transform_1, window_bounds = array<i64: 72, 128>}, {pipeline_mode = #tpu.pipeline_mode<synchronous>, transform_indices = @transform_2, window_bounds = array<i64: 32, 256>}, {pipeline_mode = #tpu.pipeline_mode<synchronous>, transform_indices = @transform_3, window_bounds = array<i64: 128, 32>}, {pipeline_mode = #tpu.pipeline_mode<synchronous>, transform_indices = @transform_4, window_bounds = array<i64: 16, 32>}]} {
    %c0 = arith.constant 0 : index
    %c0_0 = arith.constant 0 : index
    %0 = vector.load %arg1[%c0, %c0_0] : memref<16x32xf32, #tpu.memory_space<vmem>>, vector<16x32xf32>
    %c0_1 = arith.constant 0 : index
    %c0_2 = arith.constant 0 : index
    %1 = vector.load %arg2[%c0_1, %c0_2] : memref<72x128xf32, #tpu.memory_space<vmem>>, vector<64x64xf32>
    %c64 = arith.constant 64 : index
    %c0_3 = arith.constant 0 : index
    %2 = vector.load %arg2[%c64, %c0_3] : memref<72x128xf32, #tpu.memory_space<vmem>>, vector<1x96xf32>
    %c65 = arith.constant 65 : index
    %c0_4 = arith.constant 0 : index
    %3 = vector.load %arg2[%c65, %c0_4] : memref<72x128xf32, #tpu.memory_space<vmem>>, vector<1x32xf32>
    %c66 = arith.constant 66 : index
    %c0_5 = arith.constant 0 : index
    %4 = vector.load %arg2[%c66, %c0_5] : memref<72x128xf32, #tpu.memory_space<vmem>>, vector<1x32xf32>
    %c67 = arith.constant 67 : index
    %c0_6 = arith.constant 0 : index
    %5 = vector.load %arg2[%c67, %c0_6] : memref<72x128xf32, #tpu.memory_space<vmem>>, vector<1x32xf32>
    %c68 = arith.constant 68 : index
    %c0_7 = arith.constant 0 : index
    %6 = vector.load %arg2[%c68, %c0_7] : memref<72x128xf32, #tpu.memory_space<vmem>>, vector<1x32xf32>
    %c69 = arith.constant 69 : index
    %c0_8 = arith.constant 0 : index
    %7 = vector.load %arg2[%c69, %c0_8] : memref<72x128xf32, #tpu.memory_space<vmem>>, vector<1x32xf32>
    %c70 = arith.constant 70 : index
    %c0_9 = arith.constant 0 : index
    %8 = vector.load %arg2[%c70, %c0_9] : memref<72x128xf32, #tpu.memory_space<vmem>>, vector<1x32xf32>
    %c71 = arith.constant 71 : index
    %c0_10 = arith.constant 0 : index
    %9 = vector.load %arg2[%c71, %c0_10] : memref<72x128xf32, #tpu.memory_space<vmem>>, vector<1x128xf32>
    %c0_11 = arith.constant 0 : index
    %c0_12 = arith.constant 0 : index
    %10 = vector.load %arg3[%c0_11, %c0_12] : memref<32x256xf32, #tpu.memory_space<vmem>>, vector<32x96xf32>
    %c0_13 = arith.constant 0 : index
    %c96 = arith.constant 96 : index
    %11 = vector.load %arg3[%c0_13, %c96] : memref<32x256xf32, #tpu.memory_space<vmem>>, vector<32x32xf32>
    %c0_14 = arith.constant 0 : index
    %c128 = arith.constant 128 : index
    %12 = vector.load %arg3[%c0_14, %c128] : memref<32x256xf32, #tpu.memory_space<vmem>>, vector<32x128xf32>
    %cst = arith.constant dense<0.000000e+00> : vector<16xf32>
    %13 = vector.multi_reduction <add>, %0, %cst [1] : vector<16x32xf32> to vector<16xf32>
    %14 = vector.shape_cast %13 : vector<16xf32> to vector<16x1xf32>
    %cst_15 = arith.constant 3.200000e+01 : f32
    %15 = vector.broadcast %cst_15 : f32 to vector<16x1xf32>
    %16 = arith.divf %14, %15 : vector<16x1xf32>
    %17 = vector.broadcast %16 : vector<16x1xf32> to vector<16x32xf32>
    %18 = arith.subf %0, %17 : vector<16x32xf32>
    %19 = arith.mulf %18, %18 : vector<16x32xf32>
    %cst_16 = arith.constant dense<0.000000e+00> : vector<16xf32>
    %20 = vector.multi_reduction <add>, %19, %cst_16 [1] : vector<16x32xf32> to vector<16xf32>
    %21 = vector.shape_cast %20 : vector<16xf32> to vector<16x1xf32>
    %cst_17 = arith.constant 3.200000e+01 : f32
    %22 = vector.broadcast %cst_17 : f32 to vector<16x1xf32>
    %23 = arith.divf %21, %22 : vector<16x1xf32>
    %cst_18 = arith.constant 9.99999974E-6 : f32
    %24 = vector.broadcast %cst_18 : f32 to vector<16x1xf32>
    %25 = arith.addf %23, %24 : vector<16x1xf32>
    %26 = math.rsqrt %25 : vector<16x1xf32>
    %27 = vector.broadcast %16 : vector<16x1xf32> to vector<16x32xf32>
    %28 = arith.subf %0, %27 : vector<16x32xf32>
    %29 = vector.broadcast %26 : vector<16x1xf32> to vector<16x32xf32>
    %30 = arith.mulf %28, %29 : vector<16x32xf32>
    %31 = vector.broadcast %3 : vector<1x32xf32> to vector<16x32xf32>
    %32 = arith.mulf %30, %31 : vector<16x32xf32>
    %33 = vector.broadcast %4 : vector<1x32xf32> to vector<16x32xf32>
    %34 = arith.addf %32, %33 : vector<16x32xf32>
    %cst_19 = arith.constant dense<0.000000e+00> : vector<16x96xf32>
    %35 = tpu.matmul %34, %10, %cst_19 {dimension_numbers = #tpu.dot_dimension_numbers<[1], [0], [0], [1], [0, 0, 1, 1], [], []>} : vector<16x32xf32>, vector<32x96xf32>, vector<16x96xf32> -> vector<16x96xf32>
    %36 = vector.broadcast %2 : vector<1x96xf32> to vector<16x96xf32>
    %37 = arith.addf %35, %36 : vector<16x96xf32>
    %38 = vector.extract_strided_slice %37 {offsets = [0, 0], sizes = [16, 32], strides = [1, 1]} : vector<16x96xf32> to vector<16x32xf32>
    %39 = vector.extract_strided_slice %38 {offsets = [0, 0], sizes = [16, 8], strides = [1, 1]} : vector<16x32xf32> to vector<16x8xf32>
    %40 = vector.extract_strided_slice %38 {offsets = [0, 8], sizes = [16, 8], strides = [1, 1]} : vector<16x32xf32> to vector<16x8xf32>
    %41 = vector.extract_strided_slice %38 {offsets = [0, 16], sizes = [16, 8], strides = [1, 1]} : vector<16x32xf32> to vector<16x8xf32>
    %42 = vector.extract_strided_slice %38 {offsets = [0, 24], sizes = [16, 8], strides = [1, 1]} : vector<16x32xf32> to vector<16x8xf32>
    %43 = tpu.concatenate %39, %40, %41, %42 in 0 : vector<16x8xf32>, vector<16x8xf32>, vector<16x8xf32>, vector<16x8xf32> -> vector<64x8xf32>
    %44 = vector.extract_strided_slice %37 {offsets = [0, 32], sizes = [16, 32], strides = [1, 1]} : vector<16x96xf32> to vector<16x32xf32>
    %45 = vector.extract_strided_slice %44 {offsets = [0, 0], sizes = [16, 8], strides = [1, 1]} : vector<16x32xf32> to vector<16x8xf32>
    %46 = vector.extract_strided_slice %44 {offsets = [0, 8], sizes = [16, 8], strides = [1, 1]} : vector<16x32xf32> to vector<16x8xf32>
    %47 = vector.extract_strided_slice %44 {offsets = [0, 16], sizes = [16, 8], strides = [1, 1]} : vector<16x32xf32> to vector<16x8xf32>
    %48 = vector.extract_strided_slice %44 {offsets = [0, 24], sizes = [16, 8], strides = [1, 1]} : vector<16x32xf32> to vector<16x8xf32>
    %49 = tpu.concatenate %45, %46, %47, %48 in 0 : vector<16x8xf32>, vector<16x8xf32>, vector<16x8xf32>, vector<16x8xf32> -> vector<64x8xf32>
    %50 = vector.extract_strided_slice %37 {offsets = [0, 64], sizes = [16, 32], strides = [1, 1]} : vector<16x96xf32> to vector<16x32xf32>
    %51 = vector.extract_strided_slice %50 {offsets = [0, 0], sizes = [16, 8], strides = [1, 1]} : vector<16x32xf32> to vector<16x8xf32>
    %52 = vector.extract_strided_slice %50 {offsets = [0, 8], sizes = [16, 8], strides = [1, 1]} : vector<16x32xf32> to vector<16x8xf32>
    %53 = vector.extract_strided_slice %50 {offsets = [0, 16], sizes = [16, 8], strides = [1, 1]} : vector<16x32xf32> to vector<16x8xf32>
    %54 = vector.extract_strided_slice %50 {offsets = [0, 24], sizes = [16, 8], strides = [1, 1]} : vector<16x32xf32> to vector<16x8xf32>
    %55 = tpu.concatenate %51, %52, %53, %54 in 0 : vector<16x8xf32>, vector<16x8xf32>, vector<16x8xf32>, vector<16x8xf32> -> vector<64x8xf32>
    %cst_20 = arith.constant dense<0.000000e+00> : vector<64x64xf32>
    %56 = tpu.matmul %43, %49, %cst_20 {dimension_numbers = #tpu.dot_dimension_numbers<[1], [1], [0], [0], [0, 0, 1, 0], [], []>} : vector<64x8xf32>, vector<64x8xf32>, vector<64x64xf32> -> vector<64x64xf32>
    %57 = arith.addf %56, %1 : vector<64x64xf32>
    %cst_21 = arith.constant dense<0xFF800000> : vector<64xf32>
    %58 = vector.multi_reduction <maximumf>, %57, %cst_21 [1] : vector<64x64xf32> to vector<64xf32>
    %59 = vector.shape_cast %58 : vector<64xf32> to vector<64x1xf32>
    %60 = vector.broadcast %59 : vector<64x1xf32> to vector<64x64xf32>
    %61 = arith.subf %57, %60 : vector<64x64xf32>
    %62 = math.exp %61 : vector<64x64xf32>
    %cst_22 = arith.constant dense<0.000000e+00> : vector<64xf32>
    %63 = vector.multi_reduction <add>, %62, %cst_22 [1] : vector<64x64xf32> to vector<64xf32>
    %64 = vector.shape_cast %63 : vector<64xf32> to vector<64x1xf32>
    %65 = vector.broadcast %64 : vector<64x1xf32> to vector<64x64xf32>
    %66 = arith.divf %62, %65 : vector<64x64xf32>
    %cst_23 = arith.constant dense<0.000000e+00> : vector<64x8xf32>
    %67 = tpu.matmul %66, %55, %cst_23 {dimension_numbers = #tpu.dot_dimension_numbers<[1], [0], [0], [1], [0, 0, 1, 1], [], []>} : vector<64x64xf32>, vector<64x8xf32>, vector<64x8xf32> -> vector<64x8xf32>
    %68 = vector.extract_strided_slice %67 {offsets = [0, 0], sizes = [16, 8], strides = [1, 1]} : vector<64x8xf32> to vector<16x8xf32>
    %69 = vector.extract_strided_slice %67 {offsets = [16, 0], sizes = [16, 8], strides = [1, 1]} : vector<64x8xf32> to vector<16x8xf32>
    %70 = vector.extract_strided_slice %67 {offsets = [32, 0], sizes = [16, 8], strides = [1, 1]} : vector<64x8xf32> to vector<16x8xf32>
    %71 = vector.extract_strided_slice %67 {offsets = [48, 0], sizes = [16, 8], strides = [1, 1]} : vector<64x8xf32> to vector<16x8xf32>
    %72 = tpu.concatenate %68, %69, %70, %71 in 1 : vector<16x8xf32>, vector<16x8xf32>, vector<16x8xf32>, vector<16x8xf32> -> vector<16x32xf32>
    %cst_24 = arith.constant dense<0.000000e+00> : vector<16x32xf32>
    %73 = tpu.matmul %72, %11, %cst_24 {dimension_numbers = #tpu.dot_dimension_numbers<[1], [0], [0], [1], [0, 0, 1, 1], [], []>} : vector<16x32xf32>, vector<32x32xf32>, vector<16x32xf32> -> vector<16x32xf32>
    %74 = vector.broadcast %7 : vector<1x32xf32> to vector<16x32xf32>
    %75 = arith.addf %73, %74 : vector<16x32xf32>
    %76 = arith.addf %0, %75 : vector<16x32xf32>
    %cst_25 = arith.constant dense<0.000000e+00> : vector<16xf32>
    %77 = vector.multi_reduction <add>, %76, %cst_25 [1] : vector<16x32xf32> to vector<16xf32>
    %78 = vector.shape_cast %77 : vector<16xf32> to vector<16x1xf32>
    %cst_26 = arith.constant 3.200000e+01 : f32
    %79 = vector.broadcast %cst_26 : f32 to vector<16x1xf32>
    %80 = arith.divf %78, %79 : vector<16x1xf32>
    %81 = vector.broadcast %80 : vector<16x1xf32> to vector<16x32xf32>
    %82 = arith.subf %76, %81 : vector<16x32xf32>
    %83 = arith.mulf %82, %82 : vector<16x32xf32>
    %cst_27 = arith.constant dense<0.000000e+00> : vector<16xf32>
    %84 = vector.multi_reduction <add>, %83, %cst_27 [1] : vector<16x32xf32> to vector<16xf32>
    %85 = vector.shape_cast %84 : vector<16xf32> to vector<16x1xf32>
    %cst_28 = arith.constant 3.200000e+01 : f32
    %86 = vector.broadcast %cst_28 : f32 to vector<16x1xf32>
    %87 = arith.divf %85, %86 : vector<16x1xf32>
    %cst_29 = arith.constant 9.99999974E-6 : f32
    %88 = vector.broadcast %cst_29 : f32 to vector<16x1xf32>
    %89 = arith.addf %87, %88 : vector<16x1xf32>
    %90 = math.rsqrt %89 : vector<16x1xf32>
    %91 = vector.broadcast %80 : vector<16x1xf32> to vector<16x32xf32>
    %92 = arith.subf %76, %91 : vector<16x32xf32>
    %93 = vector.broadcast %90 : vector<16x1xf32> to vector<16x32xf32>
    %94 = arith.mulf %92, %93 : vector<16x32xf32>
    %95 = vector.broadcast %5 : vector<1x32xf32> to vector<16x32xf32>
    %96 = arith.mulf %94, %95 : vector<16x32xf32>
    %97 = vector.broadcast %6 : vector<1x32xf32> to vector<16x32xf32>
    %98 = arith.addf %96, %97 : vector<16x32xf32>
    %cst_30 = arith.constant dense<0.000000e+00> : vector<16x128xf32>
    %99 = tpu.matmul %98, %12, %cst_30 {dimension_numbers = #tpu.dot_dimension_numbers<[1], [0], [0], [1], [0, 0, 1, 1], [], []>} : vector<16x32xf32>, vector<32x128xf32>, vector<16x128xf32> -> vector<16x128xf32>
    %100 = vector.broadcast %9 : vector<1x128xf32> to vector<16x128xf32>
    %101 = arith.addf %99, %100 : vector<16x128xf32>
    %cst_31 = arith.constant 5.000000e-01 : f32
    %102 = vector.broadcast %cst_31 : f32 to vector<16x128xf32>
    %103 = arith.mulf %102, %101 : vector<16x128xf32>
    %cst_32 = arith.constant 2.000000e+00 : f32
    %104 = math.sqrt %cst_32 : f32
    %105 = vector.broadcast %104 : f32 to vector<16x128xf32>
    %106 = arith.divf %101, %105 : vector<16x128xf32>
    %107 = math.erf %106 : vector<16x128xf32>
    %cst_33 = arith.constant 1.000000e+00 : f32
    %108 = vector.broadcast %cst_33 : f32 to vector<16x128xf32>
    %109 = arith.addf %108, %107 : vector<16x128xf32>
    %110 = arith.mulf %103, %109 : vector<16x128xf32>
    %c0_34 = arith.constant 0 : index
    %c0_35 = arith.constant 0 : index
    %111 = vector.load %arg4[%c0_34, %c0_35] : memref<128x32xf32, #tpu.memory_space<vmem>>, vector<128x32xf32>
    %cst_36 = arith.constant dense<0.000000e+00> : vector<16x32xf32>
    %112 = tpu.matmul %110, %111, %cst_36 {dimension_numbers = #tpu.dot_dimension_numbers<[1], [0], [0], [1], [0, 0, 1, 1], [], []>} : vector<16x128xf32>, vector<128x32xf32>, vector<16x32xf32> -> vector<16x32xf32>
    %113 = vector.broadcast %8 : vector<1x32xf32> to vector<16x32xf32>
    %114 = arith.addf %112, %113 : vector<16x32xf32>
    %115 = arith.addf %76, %114 : vector<16x32xf32>
    %c0_37 = arith.constant 0 : index
    %c0_38 = arith.constant 0 : index
    %116 = vector.load %arg5[%c0_37, %c0_38] : memref<16x32xf32, #tpu.memory_space<vmem>>, vector<16x32xf32>
    tpu.vector_store %arg5[%c0_37, %c0_38], %115 {strides = array<i32>} : memref<16x32xf32, #tpu.memory_space<vmem>>, vector<16x32xf32>,
    return
  }
  func.func @transform_0(%arg0: i32) -> (i32, i32) {
    %c0_i32 = arith.constant 0 : i32
    %c0_i32_0 = arith.constant 0 : i32
    %c0_i32_1 = arith.constant 0 : i32
    return %c0_i32, %c0_i32_0 : i32, i32
  }
  func.func @transform_1(%arg0: i32) -> (i32, i32) {
    %c0_i32 = arith.constant 0 : i32
    %c0_i32_0 = arith.constant 0 : i32
    %c0_i32_1 = arith.constant 0 : i32
    return %c0_i32, %c0_i32_0 : i32, i32
  }
  func.func @transform_2(%arg0: i32) -> (i32, i32) {
    %c0_i32 = arith.constant 0 : i32
    %c0_i32_0 = arith.constant 0 : i32
    %c0_i32_1 = arith.constant 0 : i32
    return %c0_i32, %c0_i32_0 : i32, i32
  }
  func.func @transform_3(%arg0: i32) -> (i32, i32) {
    %c0_i32 = arith.constant 0 : i32
    %c0_i32_0 = arith.constant 0 : i32
    %c0_i32_1 = arith.constant 0 : i32
    return %c0_i32, %c0_i32_0 : i32, i32
  }
  func.func @transform_4(%arg0: i32) -> (i32, i32) {
    %c0_i32 = arith.constant 0 : i32
    %c0_i32_0 = arith.constant 0 : i32
    %c0_i32_1 = arith.constant 0 : i32
    return %c0_i32, %c0_i32_0 : i32, i32
  }
}

</mosaic_0001>

<bundles_post_ra>
// kernel: tpu_custom_call.1
= control target key start
LH: loop header
LB: loop body
LE: loop exit
PB: predicated region body
PF: predicated region fallthrough
CT: control target
= control target key end

     0   :  { %vm44_vm0 = vcmask 261120   ;;  %s1744_s0 = inlined_call_operand.vmem [shape: f32[16,32], index: 0, kind: input, shape index: {}]   ;;  %s1745_s1 = inlined_call_operand.vmem [shape: f32[72,128], index: 1, kind: input, shape index: {}]   ;;  %s1746_s2 = inlined_call_operand.vmem [shape: f32[32,256], index: 2, kind: input, shape index: {}]   ;;  %s1747_s3 = inlined_call_operand.vmem [shape: f32[128,32], index: 3, kind: input, shape index: {}]   ;;  %s1748_s4 = inlined_call_operand.hbm [shape: f32[16,32], index: 4, kind: output, shape index: {}]  }
   0x1   :  { %v1457_v0 = vld [vmem:[%s1744_s0] sm:$0xff]  ;;  %v1462_v1 = vld [vmem:[%s1744_s0 + $0x8] sm:$0xff] }
   0x2   :  { %9 = vsyncpa [#allocation3], 0  ;;  %v45_v2 = vsel %vm44_vm0, %v1457_v0, 0.0  ;;  %v48_v3 = vsel %vm44_vm0, %v1462_v1, 0.0  ;;  %v1475_v14 = vld [vmem:[%s1746_s2] sm:$0xff]  ;;  %v1480_v15 = vld [vmem:[%s1746_s2 + $0x10] sm:$0xff] }
   0x3   :  { %46 = vadd.xlane.f32.xlu0 %v45_v2  ;;  %v1485_v16 = vld [vmem:[%s1746_s2 + $0x20] sm:$0xff]  ;;  %v1340_v17 = vpack.i.bf16 %v1480_v15, %v1475_v14  ;;  %v1193_v18 = vpack.c.bf16 %v1480_v15, %v1475_v14  ;;  %v1494_v19 = vld [vmem:[%s1746_s2 + $0x30] sm:$0xff]  ;;  %vm199_vm1 = vcmask 64512   ;;  %s1418_s6 = smov 120   ;;  %s1419_s7 = smov 112   ;;  %vm337_vm3 = vcmask 523264  }
   0x4   :  { %v1197_v20 = vpack.c.bf16 %v1494_v19, %v1485_v16  ;;  %v963_v28 = vld [vmem:[%s1745_s1 + $0x41] ss:$0 sm:$0xff]  ;;  %v964_v30 = vld [vmem:[%s1745_s1 + $0x42] ss:$0 sm:$0xff]  ;;  %v965_v37 = vld [vmem:[%s1745_s1 + $0x40] ss:$0 sm:$0xff] }
   0x5   :  { %1194 = vmatprep.subr.bf16.mxu0 %v1193_v18  ;;  %s1420_s8 = smov 104   ;;  %s1421_s9 = smov 96   ;;  %vm1521_vm2 = vmpackc.low %vm199_vm1, %vm199_vm1  ;;  %vm605_vm4 = vcmask 130048   ;;  %vm608_vm5 = vcmask 195584  }
   0x6   :  { %1196 = vmatpush3.bf16.msra.mxu0 %v1193_v18  ;;  %s1422_s25 = smov 64   ;;  %s1423_s26 = smov 32  }
   0x7   :  { %49 = vadd.xlane.f32.xlu0 %v48_v3  ;;  %1198 = vmatprep.subr.bf16.mxu0 %v1197_v20  ;;  %s1424_s27 = smov 8   ;;  %s1425_s28 = smov 16  }
   0x8   :  { %s1426_s29 = smov 24   ;;  %s1427_s24 = smov [#allocation2]  }
   0xa   :  { %1200 = vmatpush3.bf16.msra.mxu0 %v1197_v20 }
  0x90   :  { %v47_v4 = vpop.xlane.xlu0 %46 }
  0x91   :  { %v52_v5 = vmul.f32 0.03125, %v47_v4 }
  0x93   :  { %v54_v6 = vsub.f32 %v1457_v0, %v52_v5 }
  0x94   :  { %v50_v7 = vpop.xlane.xlu0 %49 }
  0x95   :  { %v53_v8 = vmul.f32 0.03125, %v50_v7  ;;  %v56_v9 = vmul.f32 %v54_v6, %v54_v6  ;;  %v21_v7 = vld [vmem:[%s1745_s1 + $0x8] sm:$0xff] }
  0x97   :  { %v55_v10 = vsub.f32 %v1462_v1, %v53_v8  ;;  %v58_v11 = vsel %vm44_vm0, %v56_v9, 0.0  ;;  %v20_v8 = vld [vmem:[%s1745_s1] sm:$0xff] }
  0x98   :  { %59 = vadd.xlane.f32.xlu1 %v58_v11 }
  0x99   :  { %v57_v12 = vmul.f32 %v55_v10, %v55_v10 }
  0x9b   :  { %v61_v13 = vsel %vm44_vm0, %v57_v12, 0.0 }
  0x9c   :  { %62 = vadd.xlane.f32.xlu1 %v61_v13  ;;  %v23_v13 = vld [vmem:[%s1745_s1 + $0x18] sm:$0xff] }
 0x125   :  { %v60_v21 = vpop.xlane.xlu1 %59 }
 0x126   :  { %v64_v22 = vmul.f32 0.03125, %v60_v21 }
 0x128   :  { %v66_v23 = vadd.f32 1e-05, %v64_v22 }
 0x129   :  { %v63_v24 = vpop.xlane.xlu1 %62 }
 0x12a   :  { %1350 = vrsqrt.f32 %v66_v23  ;;  %v65_v25 = vmul.f32 0.03125, %v63_v24  ;;  %v22_v24 = vld [vmem:[%s1745_s1 + $0x10] sm:$0xff] }
 0x12c   :  { %v67_v26 = vadd.f32 1e-05, %v65_v25  ;;  %v25_v25 = vld [vmem:[%s1745_s1 + $0x28] sm:$0xff] }
 0x12e   :  { %1352 = vrsqrt.f32 %v67_v26 }
 0x134   :  { %v1351_v27 = vpop.eup %1350 }
 0x135   :  { %v70_v29 = vmul.f32 %v1351_v27, %v54_v6 }
 0x137   :  { %v76_v31 = vmul.f32 %v963_v28, %v70_v29 }
 0x138   :  { %v1353_v32 = vpop.eup %1352 }
 0x139   :  { %v71_v33 = vmul.f32 %v1353_v32, %v55_v10  ;;  %v82_v34 = vadd.f32 %v964_v30, %v76_v31  ;;  %v24_v31 = vld [vmem:[%s1745_s1 + $0x20] sm:$0xff]  ;;  %v27_v32 = vld [vmem:[%s1745_s1 + $0x38] sm:$0xff] }
 0x13b   :  { %v77_v35 = vmul.f32 %v963_v28, %v71_v33  ;;  %1077 = vmatprep.mubr.msk.f32.mxu0 %vm44_vm0, %v82_v34 }
 0x13d   :  { %v83_v36 = vadd.f32 %v964_v30, %v77_v35 }
 0x13f   :  { %1078 = vmatmul.mubr.msk.f32.vlgmr.msra.gmra.mrb[0].mxu0 %vm44_vm0, %v83_v36 }
 0x212   :  { %v1079_v38 = vpop.f32.mrb[0].mxu0 }
 0x213   :  { %v166_v39 = vadd.f32 %v1079_v38, %v965_v37  ;;  %v160_v40 = vpop.f32.mrb[1].mxu0 }
 0x214   :  { %v161_v41 = vadd.f32 %v965_v37, %v160_v40 }
 0x215   :  { %173 = vrot.lane.b32.xlu1 %v166_v39, %s1418_s6 }
 0x216   :  { %171 = vrot.lane.b32.xlu0 %v161_v41, %s1418_s6  ;;  %1096 = vmatprep.mubr.msk.f32.mxu1 %vm199_vm1, %v161_v41  ;;  %v1510_v42 = vpack.i.bf16 %v166_v39, %v161_v41 }
 0x219   :  { %175 = vrot.lane.b32.xlu1 %v161_v41, %s1419_s7 }
 0x21a   :  { %179 = vrot.lane.b32.xlu0 %v161_v41, %s1420_s8 }
 0x21d   :  { %177 = vrot.lane.b32.xlu1 %v166_v39, %s1419_s7 }
 0x21e   :  { %1301 = vrot.lane.b32.xlu0 %v1510_v42, %s1421_s9 }
 0x221   :  { %181 = vrot.lane.b32.xlu1 %v166_v39, %s1420_s8 }
 0x287   :  { %v174_v43 = vpop.permute.xlu1 %173 }
 0x288   :  { %v172_v44 = vpop.permute.xlu0 %171 }
 0x289   :  { %v1513_v45 = vpack.i.bf16 %v174_v43, %v172_v44 }
 0x28b   :  { %v176_v46 = vpop.permute.xlu1 %175  ;;  %1306 = vrot.lane.b32.xlu1 %v1513_v45, %s1421_s9 }
 0x28c   :  { %v180_v47 = vpop.permute.xlu0 %179 }
 0x28f   :  { %v178_v48 = vpop.permute.xlu1 %177 }
 0x290   :  { %v1516_v49 = vpack.i.bf16 %v178_v48, %v176_v46  ;;  %v1302_v50 = vpop.permute.xlu0 %1301 }
 0x291   :  { %v1304_v51 = vunpack.i.h.bf16 %v1302_v50  ;;  %v1303_v52 = vunpack.i.l.bf16 %v1302_v50 }
 0x292   :  { %1311 = vrot.lane.b32.xlu0 %v1516_v49, %s1421_s9 }
 0x293   :  { %v182_v54 = vpop.permute.xlu1 %181  ;;  %v1201_v55 = vpack.c.bf16 %v1304_v51, %v1303_v52 }
 0x294   :  { %v1525_v56 = vpack.i.bf16 %v182_v54, %v180_v47 }
 0x295   :  { %1203 = vmatprep.subr.msk.bf16.mxu1 %vm1521_vm2, %v1201_v55 }
 0x296   :  { %1316 = vrot.lane.b32.xlu1 %v1525_v56, %s1421_s9  ;;  %1206 = vmatpush3.bf16.xpose.msk.msra.mxu1 %vm1521_vm2, %v1201_v55 }
 0x2fd   :  { %v1307_v57 = vpop.permute.xlu1 %1306 }
 0x2fe   :  { %v1309_v58 = vunpack.i.h.bf16 %v1307_v57  ;;  %v1308_v59 = vunpack.i.l.bf16 %v1307_v57 }
 0x300   :  { %v1207_v60 = vpack.c.bf16 %v1309_v58, %v1308_v59 }
 0x302   :  { %1209 = vmatprep.subr.msk.bf16.mxu1 %vm1521_vm2, %v1207_v60 }
 0x303   :  { %1212 = vmatpush3.bf16.xpose.msk.msra.mxu1 %vm1521_vm2, %v1207_v60 }
 0x304   :  { %v1312_v61 = vpop.permute.xlu0 %1311 }
 0x305   :  { %v1314_v62 = vunpack.i.h.bf16 %v1312_v61  ;;  %v1313_v63 = vunpack.i.l.bf16 %v1312_v61 }
 0x307   :  { %v1213_v2 = vpack.c.bf16 %v1314_v62, %v1313_v63 }
 0x308   :  { %v1317_v3 = vpop.permute.xlu1 %1316 }
 0x309   :  { %v1319_v4 = vunpack.i.h.bf16 %v1317_v3  ;;  %v1318_v5 = vunpack.i.l.bf16 %v1317_v3  ;;  %1215 = vmatprep.subr.msk.bf16.mxu1 %vm1521_vm2, %v1213_v2 }
 0x30b   :  { %v1219_v6 = vpack.c.bf16 %v1319_v4, %v1318_v5  ;;  %1218 = vmatpush3.bf16.xpose.msk.msra.mxu1 %vm1521_vm2, %v1213_v2 }
 0x30d   :  { %1221 = vmatprep.subr.msk.bf16.mxu1 %vm1521_vm2, %v1219_v6 }
 0x313   :  { %1224 = vmatpush3.bf16.xpose.msk.msra.mxu1 %vm1521_vm2, %v1219_v6 }
 0x31a   :  { %1097 = vmatmul.mubr.msk.f32.vlgmr.msra.gmra.mrb[0].mxu1 %vm199_vm1, %v166_v39  ;;  %v26_v39 = vld [vmem:[%s1745_s1 + $0x30] sm:$0xff] }
 0x31b   :  { %1099 = vmatprep.mubr.msk.f32.mxu1 %vm199_vm1, %v172_v44 }
 0x31e   :  { %1100 = vmatmul.mubr.msk.f32.gmra.mrb[2].mxu1 %vm199_vm1, %v174_v43 }
 0x31f   :  { %1102 = vmatprep.mubr.msk.f32.mxu1 %vm199_vm1, %v176_v46 }
 0x322   :  { %1103 = vmatmul.mubr.msk.f32.gmra.mrb[4].mxu1 %vm199_vm1, %v178_v48 }
 0x323   :  { %1105 = vmatprep.mubr.msk.f32.mxu1 %vm199_vm1, %v180_v47 }
 0x326   :  { %1106 = vmatmul.mubr.msk.f32.gmra.mrb[6].mxu1 %vm199_vm1, %v182_v54 }
 0x3ed   :  { %v1098_v9 = vpop.f32.mrb[0].mxu1 }
 0x3ee   :  { %v304_v10 = vadd.f32 %v1098_v9, %v21_v7  ;;  %v298_v11 = vpop.f32.mrb[1].mxu1 }
 0x3ef   :  { %v299_v12 = vadd.f32 %v298_v11, %v20_v8 }
 0x3f0   :  { %v341_v18 = vsel %vm337_vm3, %v304_v10, -inf }
 0x3f1   :  { %342 = vmax.xlane.f32.xlu1 %v341_v18  ;;  %v1101_v20 = vpop.f32.mrb[2].mxu1  ;;  %v338_v21 = vsel %vm337_vm3, %v299_v12, -inf }
 0x3f2   :  { %v314_v22 = vadd.f32 %v1101_v20, %v23_v13  ;;  %v308_v23 = vpop.f32.mrb[3].mxu1  ;;  %339 = vmax.xlane.f32.xlu0 %v338_v21 }
 0x3f3   :  { %v309_v27 = vadd.f32 %v308_v23, %v22_v24 }
 0x3f4   :  { %v347_v26 = vsel %vm337_vm3, %v314_v22, -inf }
 0x3f5   :  { %v1104_v28 = vpop.f32.mrb[4].mxu1  ;;  %v344_v36 = vsel %vm337_vm3, %v309_v27, -inf }
 0x3f6   :  { %v324_v29 = vadd.f32 %v1104_v28, %v25_v25  ;;  %v318_v30 = vpop.f32.mrb[5].mxu1  ;;  %348 = vmax.xlane.f32.xlu0 %v347_v26 }
 0x3f7   :  { %v319_v34 = vadd.f32 %v318_v30, %v24_v31 }
 0x3f8   :  { %v353_v33 = vsel %vm337_vm3, %v324_v29, -inf }
 0x3f9   :  { %354 = vmax.xlane.f32.xlu1 %v353_v33  ;;  %v1107_v35 = vpop.f32.mrb[6].mxu1  ;;  %v350_v43 = vsel %vm337_vm3, %v319_v34, -inf }
 0x3fa   :  { %v334_v37 = vadd.f32 %v1107_v35, %v27_v32  ;;  %v328_v38 = vpop.f32.mrb[7].mxu1  ;;  %345 = vmax.xlane.f32.xlu0 %v344_v36 }
 0x3fb   :  { %v329_v41 = vadd.f32 %v328_v38, %v26_v39 }
 0x3fc   :  { %v359_v40 = vsel %vm337_vm3, %v334_v37, -inf }
 0x3fd   :  { %360 = vmax.xlane.f32.xlu1 %v359_v40  ;;  %v356_v44 = vsel %vm337_vm3, %v329_v41, -inf }
 0x3fe   :  { %351 = vmax.xlane.f32.xlu0 %v350_v43 }
 0x402   :  { %357 = vmax.xlane.f32.xlu0 %v356_v44 }
 0x40e   :  { %1326 = vrot.lane.b32.xlu1 %v1513_v45, %s1422_s25 }
 0x418   :  { %1321 = vrot.lane.b32.xlu0 %v1510_v42, %s1422_s25 }
 0x47e   :  { %v343_v46 = vpop.xlane.xlu1 %342 }
 0x47f   :  { %v363_v47 = vsub.f32 %v304_v10, %v343_v46  ;;  %v340_v48 = vpop.xlane.xlu0 %339 }
 0x480   :  { %v362_v50 = vsub.f32 %v299_v12, %v340_v48 }
 0x481   :  { %v372_v51 = vmul.f32 1.442695, %v363_v47 }
 0x482   :  { %v370_v52 = vmul.f32 1.442695, %v362_v50 }
 0x483   :  { %1354 = vpow2.f32 %v372_v51  ;;  %v349_v53 = vpop.xlane.xlu0 %348 }
 0x484   :  { %1356 = vpow2.f32 %v370_v52  ;;  %v365_v54 = vsub.f32 %v314_v22, %v349_v53 }
 0x486   :  { %v376_v55 = vmul.f32 1.442695, %v365_v54  ;;  %v355_v57 = vpop.xlane.xlu1 %354 }
 0x487   :  { %v367_v58 = vsub.f32 %v324_v29, %v355_v57  ;;  %v346_v59 = vpop.xlane.xlu0 %345 }
 0x488   :  { %1358 = vpow2.f32 %v376_v55  ;;  %v364_v60 = vsub.f32 %v309_v27, %v346_v59 }
 0x489   :  { %v380_v45 = vmul.f32 1.442695, %v367_v58 }
 0x48a   :  { %v374_v61 = vmul.f32 1.442695, %v364_v60  ;;  %v361_v62 = vpop.xlane.xlu1 %360 }
 0x48b   :  { %1360 = vpow2.f32 %v380_v45  ;;  %v369_v42 = vsub.f32 %v334_v37, %v361_v62  ;;  %v352_v63 = vpop.xlane.xlu0 %351 }
 0x48c   :  { %1362 = vpow2.f32 %v374_v61  ;;  %v366_v2 = vsub.f32 %v319_v34, %v352_v63 }
 0x48d   :  { %v1587_v3 = vpop.eup %1354  ;;  %v384_v4 = vmul.f32 1.442695, %v369_v42 }
 0x48e   :  { %v1357_v5 = vpop.eup %1356  ;;  %v378_v6 = vmul.f32 1.442695, %v366_v2  ;;  %v389_v7 = vsel %vm337_vm3, %v1587_v3, 0.0  ;;  %v1327_v12 = vpop.permute.xlu1 %1326 }
 0x48f   :  { %1364 = vpow2.f32 %v384_v4  ;;  %390 = vadd.xlane.f32.xlu1 %v389_v7  ;;  %v358_v8 = vpop.xlane.xlu0 %357  ;;  %v386_v9 = vsel %vm337_vm3, %v1357_v5, 0.0  ;;  %v1329_v24 = vunpack.i.h.bf16 %v1327_v12  ;;  %v1328_v25 = vunpack.i.l.bf16 %v1327_v12 }
 0x490   :  { %1366 = vpow2.f32 %v378_v6  ;;  %v368_v10 = vsub.f32 %v329_v41, %v358_v8  ;;  %387 = vadd.xlane.f32.xlu0 %v386_v9  ;;  %v1345_v4 = vpack.i.bf16 %v1494_v19, %v1485_v16 }
 0x491   :  { %v1229_v31 = vpack.c.bf16 %v1329_v24, %v1328_v25 }
 0x492   :  { %v1592_v11 = vpop.eup %1358  ;;  %v382_v13 = vmul.f32 1.442695, %v368_v10 }
 0x493   :  { %v1322_v18 = vpop.permute.xlu0 %1321  ;;  %v395_v20 = vsel %vm337_vm3, %v1592_v11, 0.0 }
 0x494   :  { %1368 = vpow2.f32 %v382_v13  ;;  %v1324_v21 = vunpack.i.h.bf16 %v1322_v18  ;;  %v1323_v22 = vunpack.i.l.bf16 %v1322_v18  ;;  %396 = vadd.xlane.f32.xlu1 %v395_v20 }
 0x495   :  { %v1596_v23 = vpop.eup %1360 }
 0x496   :  { %v1363_v26 = vpop.eup %1362  ;;  %v1225_v27 = vpack.c.bf16 %v1324_v21, %v1323_v22  ;;  %v401_v28 = vsel %vm337_vm3, %v1596_v23, 0.0 }
 0x497   :  { %v392_v29 = vsel %vm337_vm3, %v1363_v26, 0.0 }
 0x498   :  { %402 = vadd.xlane.f32.xlu1 %v401_v28  ;;  %393 = vadd.xlane.f32.xlu0 %v392_v29 }
 0x499   :  { %v1601_v30 = vpop.eup %1364  ;;  %1226 = vmatprep.subr.bf16.mxu0 %v1225_v27 }
 0x49a   :  { %v1367_v32 = vpop.eup %1366  ;;  %1228 = vmatpush3.bf16.msra.mxu0 %v1225_v27  ;;  %v407_v33 = vsel %vm337_vm3, %v1601_v30, 0.0 }
 0x49b   :  { %1230 = vmatprep.subr.bf16.mxu0 %v1229_v31  ;;  %v398_v34 = vsel %vm337_vm3, %v1367_v32, 0.0 }
 0x49c   :  { %408 = vadd.xlane.f32.xlu1 %v407_v33  ;;  %399 = vadd.xlane.f32.xlu0 %v398_v34 }
 0x49e   :  { %v1369_v35 = vpop.eup %1368  ;;  %1232 = vmatpush3.bf16.msra.mxu0 %v1229_v31 }
 0x49f   :  { %v404_v36 = vsel %vm337_vm3, %v1369_v35, 0.0 }
 0x4a0   :  { %405 = vadd.xlane.f32.xlu1 %v404_v36  ;;  %v992_v36 = vld [vmem:[%s1745_s1 + $0x45] ss:$0 sm:$0xff] }
 0x4b1   :  { %1336 = vrot.lane.b32.xlu1 %v1525_v56, %s1422_s25 }
 0x4b2   :  { %1331 = vrot.lane.b32.xlu0 %v1516_v49, %s1422_s25  ;;  %s952_s25 = sshll.u32 %s1427_s24, 4  ;;  %s953_s25 = int_to_ptr.vmem [resolvable:$true] %s952_s25 }
 0x4b3   :  { %p1399_p1 = scmp.lt.s32.totalorder %s953_s25, %s953_s25 }
 0x4b5   :  { %1346 = vrot.lane.b32.xlu1 %v1345_v4, %s1423_s26 }
 0x4b6   :  { %1341 = vrot.lane.b32.xlu0 %v1340_v17, %s1423_s26  ;;  %s1394_s26 = scalar_lea.vmem %s953_s25, 256 }
 0x4b7   :  { %p1395_p0 = scmp.ne.s32.totalorder %s953_s25, %s1394_s26  ;;  %p1400_p2 = scmp.lt.s32.totalorder %s1394_s26, %s1394_s26 }
 0x4b9   :  { %p1401_p3 = por %p1400_p2, %p1399_p1 }
 0x4bb   :  { %p1402_p4 = pnand %p1401_p3, %p1395_p0 }
 0x51c   :  { %v391_v37 = vpop.xlane.xlu1 %390 }
 0x51d   :  { %v388_v38 = vpop.xlane.xlu0 %387 }
 0x51e   :  { %1370 = vrcp.f32 %v388_v38 }
 0x51f   :  { %1372 = vrcp.f32 %v391_v37 }
 0x521   :  { %v397_v39 = vpop.xlane.xlu1 %396 }
 0x525   :  { %v403_v40 = vpop.xlane.xlu1 %402  ;;  %v394_v41 = vpop.xlane.xlu0 %393 }
 0x526   :  { %1374 = vrcp.f32 %v394_v41 }
 0x527   :  { %1376 = vrcp.f32 %v397_v39 }
 0x528   :  { %v1371_v43 = vpop.eup %1370 }
 0x529   :  { %v409_v44 = vpop.xlane.xlu1 %408  ;;  %v400_v46 = vpop.xlane.xlu0 %399  ;;  %v411_v47 = vmul.f32 %v1371_v43, %v1357_v5 }
 0x52a   :  { %1378 = vrcp.f32 %v400_v46  ;;  %v1373_v53 = vpop.eup %1372 }
 0x52b   :  { %1124 = vmatprep.mubr.msk.f32.mxu0 %vm337_vm3, %v411_v47  ;;  %1380 = vrcp.f32 %v403_v40  ;;  %v413_v55 = vmul.f32 %v1373_v53, %v1587_v3 }
 0x52d   :  { %v406_v49 = vpop.xlane.xlu1 %405  ;;  %v1332_v56 = vpop.permute.xlu0 %1331 }
 0x52e   :  { %v1334_v48 = vunpack.i.h.bf16 %v1332_v56  ;;  %v1333_v50 = vunpack.i.l.bf16 %v1332_v56  ;;  %1382 = vrcp.f32 %v406_v49 }
 0x52f   :  { %1384 = vrcp.f32 %v409_v44 }
 0x530   :  { %v1233_v14 = vpack.c.bf16 %v1334_v48, %v1333_v50  ;;  %v1375_v54 = vpop.eup %1374 }
 0x531   :  { %v1337_v15 = vpop.permute.xlu1 %1336  ;;  %v1377_v57 = vpop.eup %1376  ;;  %v415_v58 = vmul.f32 %v1375_v54, %v1363_v26  ;;  %v42_v54 = vld [vmem:[%s1746_s2 + $0x28] sm:$0xff] }
 0x532   :  { %v1339_v17 = vunpack.i.h.bf16 %v1337_v15  ;;  %v1338_v51 = vunpack.i.l.bf16 %v1337_v15  ;;  %1234 = vmatprep.subr.bf16.mxu0 %v1233_v14  ;;  %v417_v60 = vmul.f32 %v1377_v57, %v1592_v11  ;;  %v1342_v5 = vpop.permute.xlu0 %1341 }
 0x533   :  { %1236 = vmatpush3.bf16.msra.mxu0 %v1233_v14  ;;  %v1344_v6 = vunpack.i.h.bf16 %v1342_v5  ;;  %v1343_v7 = vunpack.i.l.bf16 %v1342_v5 }
 0x534   :  { %v1237_v52 = vpack.c.bf16 %v1339_v17, %v1338_v51  ;;  %v1379_v59 = vpop.eup %1378  ;;  %v40_v51 = vld [vmem:[%s1746_s2 + $0x8] sm:$0xff] }
 0x535   :  { %v1381_v45 = vpop.eup %1380  ;;  %v419_v61 = vmul.f32 %v1379_v59, %v1367_v32  ;;  %v1241_v8 = vpack.c.bf16 %v1344_v6, %v1343_v7  ;;  %v1347_v9 = vpop.permute.xlu1 %1346  ;;  %v849_v59 = vld [vmem:[%s1747_s3 + $0x8] sm:$0xff] }
 0x536   :  { %1238 = vmatprep.subr.bf16.mxu0 %v1237_v52  ;;  %v421_v42 = vmul.f32 %v1381_v45, %v1596_v23  ;;  %v1349_v10 = vunpack.i.h.bf16 %v1347_v9  ;;  %v1348_v11 = vunpack.i.l.bf16 %v1347_v9 }
 0x537   :  { %1240 = vmatpush3.bf16.msra.mxu0 %v1237_v52  ;;  %v41_v52 = vld [vmem:[%s1746_s2 + $0x18] sm:$0xff] }
 0x538   :  { %v1383_v62 = vpop.eup %1382  ;;  %1242 = vmatprep.subr.bf16.mxu0 %v1241_v8  ;;  %v1245_v12 = vpack.c.bf16 %v1349_v10, %v1348_v11  ;;  %v1249_v53 = vpack.c.bf16 %v41_v52, %v40_v51  ;;  %v995_v10 = vld [vmem:[%s1745_s1 + $0x43] ss:$0 sm:$0xff] }
 0x539   :  { %v1385_v63 = vpop.eup %1384  ;;  %v423_v2 = vmul.f32 %v1383_v62, %v1369_v35 }
 0x53a   :  { %1125 = vmatmul.mubr.msk.f32.vlgmr.msra.gmra.mrb[2].mxu0 %vm337_vm3, %v413_v55  ;;  %v425_v3 = vmul.f32 %v1385_v63, %v1601_v30  ;;  %v43_v55 = vld [vmem:[%s1746_s2 + $0x38] sm:$0xff]  ;;  %v853_v63 = vld [vmem:[%s1747_s3 + $0x28] sm:$0xff] }
 0x53b   :  { %1127 = vmatprep.mubr.msk.f32.mxu0 %vm337_vm3, %v415_v58  ;;  %1244 = vmatpush3.bf16.msra.mxu0 %v1241_v8  ;;  %v1253_v57 = vpack.c.bf16 %v43_v55, %v42_v54  ;;  %v848_v58 = vld [vmem:[%s1747_s3] sm:$0xff] }
 0x53c   :  { %1246 = vmatprep.subr.bf16.mxu0 %v1245_v12  ;;  %v1257_v45 = vpack.c.bf16 %v849_v59, %v848_v58 }
 0x53e   :  { %1128 = vmatmul.mubr.msk.f32.gmra.mrb[4].mxu0 %vm337_vm3, %v417_v60  ;;  %v850_v60 = vld [vmem:[%s1747_s3 + $0x10] sm:$0xff]  ;;  %1258 = vmatprep.subr.bf16.mxu1 %v1257_v45 }
 0x53f   :  { %1130 = vmatprep.mubr.msk.f32.mxu0 %vm337_vm3, %v419_v61  ;;  %1248 = vmatpush3.bf16.msra.mxu0 %v1245_v12  ;;  %v851_v61 = vld [vmem:[%s1747_s3 + $0x18] sm:$0xff]  ;;  %v996_v12 = vld [vmem:[%s1745_s1 + $0x44] ss:$0 sm:$0xff] }
 0x540   :  { %1250 = vmatprep.subr.bf16.mxu0 %v1249_v53  ;;  %v1261_v62 = vpack.c.bf16 %v851_v61, %v850_v60  ;;  %1260 = vmatpush3.bf16.msra.mxu1 %v1257_v45 }
 0x542   :  { %1131 = vmatmul.mubr.msk.f32.gmra.mrb[6].mxu0 %vm337_vm3, %v421_v42  ;;  %v852_v42 = vld [vmem:[%s1747_s3 + $0x20] sm:$0xff]  ;;  %1262 = vmatprep.subr.bf16.mxu1 %v1261_v62 }
 0x543   :  { %1133 = vmatprep.mubr.msk.f32.mxu0 %vm337_vm3, %v423_v2  ;;  %v1265_v2 = vpack.c.bf16 %v853_v63, %v852_v42 }
 0x544   :  { %1264 = vmatpush3.bf16.msra.mxu1 %v1261_v62 }
 0x545   :  { %1266 = vmatprep.subr.bf16.mxu1 %v1265_v2 }
 0x546   :  { %1134 = vmatmul.mubr.msk.f32.gmra.mrb[8].mxu0 %vm337_vm3, %v425_v3 }
 0x548   :  { %1268 = vmatpush3.bf16.msra.mxu1 %v1265_v2 }
 0x60d   :  { %v1126_v13 = vpop.f32.mrb[2].mxu0 }
 0x60e   :  { %v540_v18 = vpop.f32.mrb[3].mxu0 }
 0x611   :  { %v1129_v20 = vpop.f32.mrb[4].mxu0 }
 0x612   :  { %583 = vrot.lane.b32.xlu1 %v1129_v20, %s1424_s27  ;;  %v550_v16 = vpop.f32.mrb[5].mxu0 }
 0x613   :  { %581 = vrot.lane.b32.xlu0 %v550_v16, %s1424_s27 }
 0x615   :  { %v1132_v19 = vpop.f32.mrb[6].mxu0 }
 0x616   :  { %591 = vrot.lane.b32.xlu1 %v1132_v19, %s1425_s28  ;;  %v560_v21 = vpop.f32.mrb[7].mxu0 }
 0x617   :  { %589 = vrot.lane.b32.xlu0 %v560_v21, %s1425_s28 }
 0x619   :  { %v1135_v22 = vpop.f32.mrb[8].mxu0 }
 0x61a   :  { %599 = vrot.lane.b32.xlu1 %v1135_v22, %s1426_s29  ;;  %v570_v23 = vpop.f32.mrb[9].mxu0  ;;  %v854_v22 = vld [vmem:[%s1747_s3 + $0x30] sm:$0xff] }
 0x61b   :  { %597 = vrot.lane.b32.xlu0 %v570_v23, %s1426_s29  ;;  %v855_v23 = vld [vmem:[%s1747_s3 + $0x38] sm:$0xff] }
 0x684   :  { %v584_v24 = vpop.permute.xlu1 %583 }
 0x685   :  { %v582_v25 = vpop.permute.xlu0 %581  ;;  %v604_v30 = vsel %vm199_vm1, %v1126_v13, %v584_v24  ;;  %v1269_v24 = vpack.c.bf16 %v855_v23, %v854_v22 }
 0x686   :  { %v603_v28 = vsel %vm199_vm1, %v540_v18, %v582_v25  ;;  %v856_v25 = vld [vmem:[%s1747_s3 + $0x40] sm:$0xff] }
 0x687   :  { %1270 = vmatprep.subr.bf16.mxu1 %v1269_v24 }
 0x688   :  { %v592_v26 = vpop.permute.xlu1 %591  ;;  %1272 = vmatpush3.bf16.msra.mxu1 %v1269_v24 }
 0x689   :  { %v590_v27 = vpop.permute.xlu0 %589  ;;  %v607_v33 = vsel %vm605_vm4, %v604_v30, %v592_v26  ;;  %v857_v26 = vld [vmem:[%s1747_s3 + $0x48] sm:$0xff] }
 0x68a   :  { %v606_v31 = vsel %vm605_vm4, %v603_v28, %v590_v27  ;;  %v1273_v27 = vpack.c.bf16 %v857_v26, %v856_v25  ;;  %v858_v28 = vld [vmem:[%s1747_s3 + $0x50] sm:$0xff] }
 0x68c   :  { %v600_v29 = vpop.permute.xlu1 %599  ;;  %1274 = vmatprep.subr.bf16.mxu1 %v1273_v27 }
 0x68d   :  { %v598_v32 = vpop.permute.xlu0 %597  ;;  %v610_v35 = vsel %vm608_vm5, %v607_v33, %v600_v29  ;;  %1276 = vmatpush3.bf16.msra.mxu1 %v1273_v27  ;;  %v859_v29 = vld [vmem:[%s1747_s3 + $0x58] sm:$0xff] }
 0x68e   :  { %v609_v34 = vsel %vm608_vm5, %v606_v31, %v598_v32  ;;  %v1277_v30 = vpack.c.bf16 %v859_v29, %v858_v28  ;;  %v860_v31 = vld [vmem:[%s1747_s3 + $0x60] sm:$0xff]  ;;  %v861_v32 = vld [vmem:[%s1747_s3 + $0x68] sm:$0xff] }
 0x68f   :  { %1144 = vmatprep.mubr.msk.f32.mxu0 %vm44_vm0, %v609_v34  ;;  %v1281_v33 = vpack.c.bf16 %v861_v32, %v860_v31  ;;  %v862_v34 = vld [vmem:[%s1747_s3 + $0x70] sm:$0xff] }
 0x690   :  { %1145 = vmatmul.mubr.msk.f32.vlgmr.msra.gmra.mrb[10].mxu0 %vm44_vm0, %v610_v35  ;;  %1278 = vmatprep.subr.bf16.mxu1 %v1277_v30  ;;  %v863_v35 = vld [vmem:[%s1747_s3 + $0x78] sm:$0xff] }
 0x691   :  { %1252 = vmatpush3.bf16.msra.mxu0 %v1249_v53  ;;  %1280 = vmatpush3.bf16.msra.mxu1 %v1277_v30 }
 0x692   :  { %1254 = vmatprep.subr.bf16.mxu0 %v1253_v57  ;;  %1282 = vmatprep.subr.bf16.mxu1 %v1281_v33 }
 0x695   :  { %1256 = vmatpush3.bf16.msra.mxu0 %v1253_v57  ;;  %1284 = vmatpush3.bf16.msra.mxu1 %v1281_v33 }
 0x763   :  { %v1146_v37 = vpop.f32.mrb[10].mxu0 }
 0x764   :  { %v709_v38 = vadd.f32 %v1146_v37, %v992_v36  ;;  %v703_v39 = vpop.f32.mrb[11].mxu0  ;;  %v997_v37 = vld [vmem:[%s1745_s1 + $0x47] ss:$0 sm:$0xff] }
 0x765   :  { %v704_v40 = vadd.f32 %v992_v36, %v703_v39  ;;  %v1285_v36 = vpack.c.bf16 %v863_v35, %v862_v34 }
 0x766   :  { %v1640_v41 = vadd.f32 %v709_v38, %v1462_v1 }
 0x767   :  { %v1643_v43 = vadd.f32 %v704_v40, %v1457_v0  ;;  %1286 = vmatprep.subr.bf16.mxu1 %v1285_v36 }
 0x768   :  { %v717_v44 = vsel %vm44_vm0, %v1640_v41, 0.0  ;;  %1288 = vmatpush3.bf16.msra.mxu1 %v1285_v36 }
 0x769   :  { %718 = vadd.xlane.f32.xlu1 %v717_v44  ;;  %v714_v46 = vsel %vm44_vm0, %v1643_v43, 0.0 }
 0x76a   :  { %715 = vadd.xlane.f32.xlu0 %v714_v46 }
 0x7f6   :  { %v719_v47 = vpop.xlane.xlu1 %718 }
 0x7f7   :  { %v721_v49 = vmul.f32 0.03125, %v719_v47  ;;  %v716_v56 = vpop.xlane.xlu0 %715 }
 0x7f8   :  { %v720_v48 = vmul.f32 0.03125, %v716_v56 }
 0x7f9   :  { %v723_v50 = vsub.f32 %v1640_v41, %v721_v49 }
 0x7fa   :  { %v722_v1 = vsub.f32 %v1643_v43, %v720_v48 }
 0x7fb   :  { %v725_v15 = vmul.f32 %v723_v50, %v723_v50 }
 0x7fc   :  { %v724_v14 = vmul.f32 %v722_v1, %v722_v1 }
 0x7fd   :  { %v729_v17 = vsel %vm44_vm0, %v725_v15, 0.0 }
 0x7fe   :  { %v726_v0 = vsel %vm44_vm0, %v724_v14, 0.0 }
 0x7ff   :  { %727 = vadd.xlane.f32.xlu0 %v726_v0 }
 0x803   :  { %730 = vadd.xlane.f32.xlu0 %v729_v17  ;;  %v1000_v17 = vld [vmem:[%s1745_s1 + $0x46] ss:$0 sm:$0xff] }
 0x88c   :  { %v728_v3 = vpop.xlane.xlu0 %727 }
 0x88d   :  { %v732_v4 = vmul.f32 0.03125, %v728_v3 }
 0x88f   :  { %v734_v5 = vadd.f32 1e-05, %v732_v4 }
 0x890   :  { %v731_v6 = vpop.xlane.xlu0 %730 }
 0x891   :  { %1386 = vrsqrt.f32 %v734_v5  ;;  %v733_v7 = vmul.f32 0.03125, %v731_v6 }
 0x893   :  { %v735_v8 = vadd.f32 1e-05, %v733_v7 }
 0x895   :  { %1388 = vrsqrt.f32 %v735_v8 }
 0x89b   :  { %v1387_v9 = vpop.eup %1386 }
 0x89c   :  { %v738_v11 = vmul.f32 %v1387_v9, %v722_v1 }
 0x89e   :  { %v744_v13 = vmul.f32 %v995_v10, %v738_v11 }
 0x89f   :  { %v1389_v18 = vpop.eup %1388 }
 0x8a0   :  { %v739_v20 = vmul.f32 %v1389_v18, %v723_v50  ;;  %v750_v16 = vadd.f32 %v996_v12, %v744_v13 }
 0x8a2   :  { %v745_v19 = vmul.f32 %v995_v10, %v739_v20  ;;  %1155 = vmatprep.mubr.msk.f32.mxu0 %vm44_vm0, %v750_v16 }
 0x8a4   :  { %v751_v21 = vadd.f32 %v996_v12, %v745_v19 }
 0x8a6   :  { %1156 = vmatmul.mubr.msk.f32.vlgmr.msra.gmra.mrb[12].mxu0 %vm44_vm0, %v751_v21 }
 0x979   :  { %v1157_v38 = vpop.f32.mrb[12].mxu0 }
 0x97a   :  { %v834_v39 = vadd.f32 %v1157_v38, %v997_v37  ;;  %v828_v40 = vpop.f32.mrb[13].mxu0 }
 0x97b   :  { %v829_v44 = vadd.f32 %v997_v37, %v828_v40 }
 0x97c   :  { %v841_v46 = vmul.f32 0.70710677, %v834_v39  ;;  %v838_v14 = vmul.f32 0.5, %v834_v39 }
 0x97d   :  { %v840_v47 = vmul.f32 0.70710677, %v829_v44  ;;  %v837_v50 = vmul.f32 0.5, %v829_v44 }
 0x97e   :  { %1390 = verf.f32 %v841_v46 }
 0x97f   :  { %1392 = verf.f32 %v840_v47 }
 0x988   :  { %v1391_v49 = vpop.eup %1390 }
 0x989   :  { %v1393_v56 = vpop.eup %1392  ;;  %v845_v48 = vadd.f32 1.0, %v1391_v49 }
 0x98a   :  { %v844_v1 = vadd.f32 1.0, %v1393_v56 }
 0x98b   :  { %v847_v15 = vmul.f32 %v845_v48, %v838_v14 }
 0x98c   :  { %v846_v0 = vmul.f32 %v844_v1, %v837_v50 }
 0x98e   :  { %1190 = vmatprep.mubr.f32.mxu1 %v846_v0 }
 0x98f   :  { %1191 = vmatmul.mubr.f32.vlgmr.msra.gmra.mrb[8].mxu1 %v847_v15 }
 0xa62   :  { %v1192_v51 = vpop.f32.mrb[8].mxu1 }
 0xa63   :  { %v940_v52 = vadd.f32 %v1192_v51, %v1000_v17  ;;  %v934_v53 = vpop.f32.mrb[9].mxu1 }
 0xa64   :  { %v935_v54 = vadd.f32 %v1000_v17, %v934_v53 }
 0xa65   :  { %v944_v55 = vadd.f32 %v940_v52, %v1640_v41 }
 0xa66   :  { %v943_v57 = vadd.f32 %v935_v54, %v1643_v43 }
 0xa67   :  { %946 = vst.msk [vmem:[#allocation2 + $0x8] sm:$0xff] %vm44_vm0, %v944_v55 }
 0xa68   :  { %945 = vst.msk [vmem:[#allocation2] sm:$0xff] %vm44_vm0, %v943_v57 }
 0xa69   :  { %1405 = shalt.err (!%p1402_p4)
}
 0xa6a   :  { %s1406_s29 = scalar_lea.hbm %s1748_s4, 256 }
 0xa6b   :  { %p1407_p5 = scmp.ne.s32.totalorder %s1748_s4, %s1406_s29  ;;  %p1410_p6 = scmp.lt.u32.totalorder %s1406_s29, %s1748_s4 }
 0xa6d   :  { %p1412_p7 = pnand %p1410_p6, %p1407_p5 }
 0xa6f   :  { %1415 = shalt.err (!%p1412_p7)
}
 0xa70   :  { %s1428_s8 = smov 128  }
 0xa71   :  { %958 = dma.vmem_to_hbm [thread:$0]  %s953_s25, 256, %s1748_s4, [#allocation3], %s1428_s8, %s1428_s8, %s1424_s27  }
 0xa72   :  { %1416 = dma.done.wait [#allocation3], 256  }
 0xa73   :  { %1417 = vsyncadd [#allocation3], 4294967040 }
 0xa74   :  { %962 = vsyncpa [#allocation3], 1 }

</bundles_post_ra>
